<compile_context>
chip_gen: v7x
topology: tpu7x:2x2x1
jax: 0.10.0
libtpu: 0.0.40
codegen_flags: <defaults>
</compile_context>

<pallas_src>
import jax
import jax.numpy as jnp
from jax.experimental import pallas as pl
from jax.experimental.pallas import tpu as pltpu


# ----------------------------------------------------------------------------
# Kernels
# ----------------------------------------------------------------------------
def _bmm_add_kernel_single_k(inp_ref, a_ref, b_ref, o_ref):
    """Whole contraction in one shot: no scratch, no branches.

    inp_ref: (TM, TN)  additive input tile
    a_ref:   (TM, Kp)  batch1 tile (full padded K)
    b_ref:   (Kp, TN)  batch2 tile (full padded K)
    o_ref:   (TM, TN)  output tile
    """
    acc = jnp.dot(a_ref[...], b_ref[...], preferred_element_type=jnp.float32)
    o_ref[...] = (acc + inp_ref[...].astype(jnp.float32)).astype(o_ref.dtype)


def _bmm_add_kernel_multi_k(inp_ref, a_ref, b_ref, o_ref, acc_ref):
    """K split across the last grid axis; f32 accumulator resident in VMEM.

    The torch.add is folded into the accumulator init on the first K step.
    """
    k = pl.program_id(3)

    @pl.when(k == 0)
    def _():
        acc_ref[...] = inp_ref[...].astype(jnp.float32)

    acc_ref[...] += jnp.dot(a_ref[...], b_ref[...],
                            preferred_element_type=jnp.float32)

    @pl.when(k == pl.num_programs(3) - 1)
    def _():
        o_ref[...] = acc_ref[...].astype(o_ref.dtype)


# ----------------------------------------------------------------------------
# Wrapper
# ----------------------------------------------------------------------------
def _round_up(x, m):
    return ((x + m - 1) // m) * m


def _pad_to(x, axis, mult):
    pad = (-x.shape[axis]) % mult
    if pad == 0:
        return x
    widths = [(0, 0)] * x.ndim
    widths[axis] = (0, pad)
    return jnp.pad(x, widths)


def bmm_add(inp, batch1, batch2, *, tm=256, tn=256, tk=512,
            single_k_max=2048, use_bf16=False):
    """out[b] = batch1[b] @ batch2[b] + inp[b]   (torch.bmm + torch.add)."""
    B, M, K = batch1.shape
    _, _, N = batch2.shape
    out_dtype = jnp.result_type(inp.dtype, batch1.dtype, batch2.dtype)

    # Additive input: use directly when already the full (B, M, N) / out dtype
    # (no HBM broadcast / astype round-trip). Lower-rank adds fall back.
    if inp.shape != (B, M, N):
        # TODO(synk): a reduced BlockSpec (e.g. (1, tn) bias tile) would avoid
        # materializing the broadcast in HBM for genuinely lower-rank inputs.
        inp = jnp.broadcast_to(inp, (B, M, N))
    if inp.dtype != out_dtype:
        inp = inp.astype(out_dtype)

    if use_bf16:
        # Halves A/B HBM+VMEM traffic and uses native bf16 MXU passes;
        # accumulation stays f32 inside the kernel.
        batch1 = batch1.astype(jnp.bfloat16)
        batch2 = batch2.astype(jnp.bfloat16)

    # Tile selection. M is a sublane dim (8-multiple suffices for f32); N and
    # K are lane dims (128-multiple). Cap tiles at the padded problem size so
    # small problems do not burn the MXU multiplying zero padding.
    tm = min(tm, _round_up(M, 8))
    tn = min(tn, _round_up(N, 128))
    k_pad128 = _round_up(K, 128)
    if k_pad128 <= single_k_max:
        tk = k_pad128                 # whole K in one step -> K axis collapses
    else:
        tk = min(tk, k_pad128)

    # Wrapper-side layout plumbing: zero-pad to tile multiples (padded K
    # contributes nothing to the contraction; padded M/N are sliced off).
    a = _pad_to(_pad_to(batch1, 1, tm), 2, tk)
    b = _pad_to(_pad_to(batch2, 1, tk), 2, tn)
    c = _pad_to(_pad_to(inp, 1, tm), 2, tn)

    Mp, Kp = a.shape[1], a.shape[2]
    Np = b.shape[2]
    n_k = Kp // tk

    if n_k == 1:
        kernel = _bmm_add_kernel_single_k
        grid = (B, Mp // tm, Np // tn)
        in_specs = [
            pl.BlockSpec((pl.Squeezed(), tm, tn),
                         lambda bi, i, j: (bi, i, j)),    # additive input
            pl.BlockSpec((pl.Squeezed(), tm, tk),
                         lambda bi, i, j: (bi, i, 0)),    # batch1
            pl.BlockSpec((pl.Squeezed(), tk, tn),
                         lambda bi, i, j: (bi, 0, j)),    # batch2
        ]
        out_specs = pl.BlockSpec((pl.Squeezed(), tm, tn),
                                 lambda bi, i, j: (bi, i, j))
        scratch_shapes = []
        dim_sem = ("parallel", "parallel", "parallel")
    else:
        kernel = _bmm_add_kernel_multi_k
        grid = (B, Mp // tm, Np // tn, n_k)
        in_specs = [
            pl.BlockSpec((pl.Squeezed(), tm, tn),
                         lambda bi, i, j, k: (bi, i, j)),  # additive input
            pl.BlockSpec((pl.Squeezed(), tm, tk),
                         lambda bi, i, j, k: (bi, i, k)),  # batch1
            pl.BlockSpec((pl.Squeezed(), tk, tn),
                         lambda bi, i, j, k: (bi, k, j)),  # batch2
        ]
        out_specs = pl.BlockSpec((pl.Squeezed(), tm, tn),
                                 lambda bi, i, j, k: (bi, i, j))
        scratch_shapes = [pltpu.VMEM((tm, tn), jnp.float32)]
        dim_sem = ("parallel", "parallel", "parallel", "arbitrary")

    out_padded = pl.pallas_call(
        kernel,
        out_shape=jax.ShapeDtypeStruct((B, Mp, Np), out_dtype),
        grid_spec=pltpu.PrefetchScalarGridSpec(
            num_scalar_prefetch=0,
            grid=grid,
            in_specs=in_specs,
            out_specs=out_specs,
            scratch_shapes=scratch_shapes,
        ),
        compiler_params=pltpu.CompilerParams(
            dimension_semantics=dim_sem,
            # Actual double-buffered footprint at the default tiles is ~10 MiB;
            # 48 MiB gives headroom while staying under v7x's 64 MiB/TC VMEM.
            vmem_limit_bytes=48 * 1024 * 1024,
        ),
    )(c, a, b)

    return out_padded[:, :M, :N]


def _reference(inp, batch1, batch2):
    return jnp.einsum("bmk,bkn->bmn", batch1, batch2,
                      precision=jax.lax.Precision.HIGHEST) + inp


if __name__ == "__main__":
    key = jax.random.PRNGKey(0)

    # Case 1: tile-aligned shapes, single-K fast path (K collapses entirely).
    B1, M1, K1, N1 = 2, 256, 256, 256
    k1, k2, k3, key = jax.random.split(key, 4)
    batch1_a = jax.random.normal(k1, (B1, M1, K1), dtype=jnp.float32)
    batch2_a = jax.random.normal(k2, (B1, K1, N1), dtype=jnp.float32)
    input_a = jax.random.normal(k3, (B1, M1, N1), dtype=jnp.float32)

    out_a = bmm_add(input_a, batch1_a, batch2_a)
    jax.block_until_ready(out_a)
    ref_a = _reference(input_a, batch1_a, batch2_a)
    assert jnp.allclose(out_a, ref_a, atol=1e-3, rtol=1e-3), \
        "mismatch vs reference (single-K path)"

    # Case 2: same shapes, but force the multi-K accumulator path
    # (tk=128 -> 2 reduction steps) to exercise the 4-D grid kernel.
    out_a2 = bmm_add(input_a, batch1_a, batch2_a, tk=128, single_k_max=0)
    jax.block_until_ready(out_a2)
    assert jnp.allclose(out_a2, ref_a, atol=1e-3, rtol=1e-3), \
        "mismatch vs reference (multi-K path)"

    # Case 3: small, non-aligned shapes (like the original torch test sizes);
    # M pads only to 16 (sublane minimum), K/N to 128 lane-dense tiles.
    B2, M2, K2, N2 = 3, 10, 20, 15
    k4, k5, k6, key = jax.random.split(key, 4)
    batch1_b = jax.random.normal(k4, (B2, M2, K2), dtype=jnp.float32)
    batch2_b = jax.random.normal(k5, (B2, K2, N2), dtype=jnp.float32)
    input_b = jax.random.normal(k6, (B2, M2, N2), dtype=jnp.float32)

    out_b = bmm_add(input_b, batch1_b, batch2_b)
    jax.block_until_ready(out_b)
    ref_b = _reference(input_b, batch1_b, batch2_b)
    assert jnp.allclose(out_b, ref_b, atol=1e-4, rtol=1e-4), \
        "mismatch vs reference (small/padded case)"

    print("KERNEL_OK")
</pallas_src>

<mosaic_0001>
module attributes {stable_mosaic.version = 11 : i64} {
  func.func @_bmm_add_kernel_single_k(%arg0: i32, %arg1: i32, %arg2: i32, %arg3: memref<1x256x256xf32, #tpu.memory_space<vmem>>, %arg4: memref<1x256x256xf32, #tpu.memory_space<vmem>>, %arg5: memref<1x256x256xf32, #tpu.memory_space<vmem>>, %arg6: memref<1x256x256xf32, #tpu.memory_space<vmem>>) attributes {dimension_semantics = [#tpu.dimension_semantics<parallel>, #tpu.dimension_semantics<parallel>, #tpu.dimension_semantics<parallel>], iteration_bounds = array<i64: 2, 1, 1>, scalar_prefetch = 0 : i64, scratch_operands = 0 : i64, tpu.core_type = #tpu.core_type<tc>, window_params = [{transform_indices = @transform_0, window_bounds = array<i64: 1, 256, 256>}, {transform_indices = @transform_1, window_bounds = array<i64: 1, 256, 256>}, {transform_indices = @transform_2, window_bounds = array<i64: 1, 256, 256>}, {transform_indices = @transform_3, window_bounds = array<i64: 1, 256, 256>}]} {
    %c0 = arith.constant 0 : index
    %c0_0 = arith.constant 0 : index
    %c0_1 = arith.constant 0 : index
    %0 = vector.load %arg4[%c0, %c0_0, %c0_1] : memref<1x256x256xf32, #tpu.memory_space<vmem>>, vector<1x256x256xf32>
    %1 = vector.shape_cast %0 : vector<1x256x256xf32> to vector<256x256xf32>
    %c0_2 = arith.constant 0 : index
    %c0_3 = arith.constant 0 : index
    %c0_4 = arith.constant 0 : index
    %2 = vector.load %arg5[%c0_2, %c0_3, %c0_4] : memref<1x256x256xf32, #tpu.memory_space<vmem>>, vector<1x256x256xf32>
    %3 = vector.shape_cast %2 : vector<1x256x256xf32> to vector<256x256xf32>
    %cst = arith.constant dense<0.000000e+00> : vector<256x256xf32>
    %4 = tpu.matmul %1, %3, %cst {dimension_numbers = #tpu.dot_dimension_numbers<[1], [0], [0], [1], [0, 0, 1, 1], [], []>} : vector<256x256xf32>, vector<256x256xf32>, vector<256x256xf32> -> vector<256x256xf32>
    %c0_5 = arith.constant 0 : index
    %c0_6 = arith.constant 0 : index
    %c0_7 = arith.constant 0 : index
    %5 = vector.load %arg3[%c0_5, %c0_6, %c0_7] : memref<1x256x256xf32, #tpu.memory_space<vmem>>, vector<1x256x256xf32>
    %6 = vector.shape_cast %5 : vector<1x256x256xf32> to vector<256x256xf32>
    %7 = arith.addf %4, %6 : vector<256x256xf32>
    %c0_8 = arith.constant 0 : index
    %c0_9 = arith.constant 0 : index
    %c0_10 = arith.constant 0 : index
    %8 = vector.load %arg6[%c0_8, %c0_9, %c0_10] : memref<1x256x256xf32, #tpu.memory_space<vmem>>, vector<1x256x256xf32>
    %9 = vector.shape_cast %8 : vector<1x256x256xf32> to vector<256x256xf32>
    %10 = vector.shape_cast %7 : vector<256x256xf32> to vector<1x256x256xf32>
    tpu.vector_store %arg6[%c0_8, %c0_9, %c0_10], %10 {strides = array<i32>} : memref<1x256x256xf32, #tpu.memory_space<vmem>>, vector<1x256x256xf32>,
    return
  }
  func.func @transform_0(%arg0: i32, %arg1: i32, %arg2: i32) -> (i32, i32, i32) {
    %c0_i32 = arith.constant 0 : i32
    return %arg0, %arg1, %arg2 : i32, i32, i32
  }
  func.func @transform_1(%arg0: i32, %arg1: i32, %arg2: i32) -> (i32, i32, i32) {
    %c0_i32 = arith.constant 0 : i32
    %c0_i32_0 = arith.constant 0 : i32
    return %arg0, %arg1, %c0_i32 : i32, i32, i32
  }
  func.func @transform_2(%arg0: i32, %arg1: i32, %arg2: i32) -> (i32, i32, i32) {
    %c0_i32 = arith.constant 0 : i32
    %c0_i32_0 = arith.constant 0 : i32
    return %arg0, %c0_i32, %arg2 : i32, i32, i32
  }
  func.func @transform_3(%arg0: i32, %arg1: i32, %arg2: i32) -> (i32, i32, i32) {
    %c0_i32 = arith.constant 0 : i32
    return %arg0, %arg1, %arg2 : i32, i32, i32
  }
}

</mosaic_0001>

<bundles_post_ra>
// kernel: tpu_custom_call.1
= control target key start
LH: loop header
LB: loop body
LE: loop exit
PB: predicated region body
PF: predicated region fallthrough
CT: control target
= control target key end

     0   :  { %s1942_s0 = inlined_call_operand.hbm [shape: f32[2,256,256], index: 0, kind: input, shape index: {}]   ;;  %s1943_s1 = inlined_call_operand.hbm [shape: f32[2,256,256], index: 1, kind: input, shape index: {}]   ;;  %s1944_s2 = inlined_call_operand.hbm [shape: f32[2,256,256], index: 2, kind: input, shape index: {}]   ;;  %s1945_s3 = inlined_call_operand.hbm [shape: f32[2,256,256], index: 3, kind: output, shape index: {}]  }
   0x1   :  { %1955 = sst [smem:[#allocation15_spill]] %s1943_s1 }
   0x2   :  { %8 = vsyncpa [#allocation3], 0 }
   0x3   :  { %10 = vsyncpa [#allocation3 + $0x1], 0 }
   0x4   :  { %11 = vsyncpa [#allocation6], 0 }
   0x5   :  { %13 = vsyncpa [#allocation6 + $0x1], 0 }
   0x6   :  { %14 = vsyncpa [#allocation4], 0 }
   0x7   :  { %16 = vsyncpa [#allocation4 + $0x1], 0  ;;  %s1393_s12 = smov 0   ;;  %s1395_s13 = smov 0  }
   0x8   :  { %s1397_s14 = smov 0   ;;  %s1399_s15 = smov 0  }
   0x9   :  { %s1401_s16 = smov 0   ;;  %s1403_s17 = smov 0  }
   0xa LB: > { %1956 = sst [smem:[#allocation12_spill]] %s1359_s16  ;;  %s1424_s18 = sadd.s32 4294967295, %s1363_s17   ;;  %s1363_s17 = sphi %s1403_s17, %s22_s17   ;;  %s1359_s16 = sphi %s1401_s16, %s1979_s16   ;;  %s1355_s15 = sphi %s1399_s15, %s1978_s15   ;;  %s1351_s14 = sphi %s1397_s14, %s1982_s14   ;;  %s1347_s13 = sphi %s1395_s13, %s1981_s13   ;;  %s1343_s12 = sphi %s1393_s12, %s1980_s12  }
   0xb   : > { %s989_s19 = sadd.s32 4294967294, %s1363_s17   ;;  %s41_s20 = sadd.s32 1, %s1359_s16 }
   0xc   : > { %s52_s21 = sadd.s32 1, %s1351_s14  ;;  %p43_p0 = scmp.ge.s32.totalorder %s41_s20, 2 }
   0xd   : > { %p59_p1 = scmp.ne.s32.totalorder %s1351_s14, %s1347_s13  ;;  %p60_p2 = scmp.eq.s32.totalorder %s1363_s17, 0 }
   0xe   : > { %p65_p3 = scmp.ne.s32.totalorder %s1347_s13, %s1343_s12  ;;  %s1984_s20 = smov (%p43_p0, %s41_s20), 0 }
   0xf   : > { %1957 = sst [smem:[#allocation13_spill]] %s1984_s20  ;;  %p1436_p4 = por %p60_p2, %p59_p1 }
  0x10   : > { %p66_p5 = scmp.eq.s32.totalorder %s1424_s18, 0  ;;  %s45_s23 = ssub.s32 %s1359_s16, %s1984_s20 }
  0x11   : > { %p149_p6 = scmp.eq.s32.totalorder %s1424_s18, 1  ;;  %p50_p7 = scmp.eq.s32.totalorder %s45_s23, 0 }
  0x12   : > { %p1444_p8 = por %p66_p5, %p65_p3  ;;  %p155_p10 = scmp.eq.s32.totalorder %s989_s19, 1 }
  0x13   : > { %p1448_p9 = por %p149_p6, %p59_p1  ;;  %p1133_p13 = scmp.lt.s32.totalorder %s1363_s17, 2 }
  0x14   : > { %s1959_s24 = scalar_select %p1444_p8, 1, 0 }
  0x15   : > { %s1960_s25 = scalar_select %p1448_p9, 1, 0 }
  0x16   : > { %s1453_s26 = scalar_select %p50_p7, %s1351_s14, %s52_s21  }
  0x17   : > { %p1455_p11 = por %p155_p10, %p65_p3  ;;  %s1948_s28 = sand.u32 1, %s1351_s14  }
  0x18   : > { %1961 = sst [smem:[#allocation14_spill]] %s1453_s26  ;;  %s1464_s29 = sshll.u32 %s1948_s28, 9 }
  0x19   : > { %s1962_s27 = scalar_select %p1455_p11, 1, 0 }
  0x1a   : > { %s1467_s30 = sshll.u32 %s1359_s16, 13  ;;  %p1471_p0 = pnand %p1133_p13, %p1436_p4 }
  0x1b   : > { %s201_s5 = sand.u32 1, %s1363_s17   ;;  %s1964_s1 = sld [smem:[#allocation15_spill]] }
  0x1c   : > { %s205_s9 = scalar_lea.vmem [#allocation5], %s1464_s29  ;;  %s1487_s11 = scalar_lea.sflag [#allocation6], %s201_s5 }
  0x1d   : > { %s215_s10 = sshll.u32 %s205_s9, 4  ;;  %p1493_p4 = pneg %p1471_p0  ;;  %s1484_s10 = int_to_ptr.vmem [resolvable:$true] %s215_s10 }
  0x21   : > { %s1480_s8 = scalar_lea.hbm %s1964_s1, %s1467_s30  ;;  %s1192_s6 = scalar_lea.hbm %s1964_s1, 16384 }
  0x22   : > { %s1187_s19 = scalar_lea.hbm %s1480_s8, 8192  ;;  %p1193_p7 = scmp.lt.u32.totalorder %s1480_s8, %s1964_s1 }
  0x23   : > { %p1188_p3 = scmp.ne.s32.totalorder %s1480_s8, %s1187_s19  ;;  %p1194_p10 = scmp.lt.u32.totalorder %s1192_s6, %s1187_s19 }
  0x24   : > { %p1196_p12 = scmp.lt.u32.totalorder %s1187_s19, %s1480_s8 }
  0x25   : > { %p1190_p5 = pnand %p1493_p4, %p1188_p3  ;;  %p1195_p13 = por %p1194_p10, %p1193_p7 }
  0x27   : > { %p1191_p6 = pneg %p1190_p5  ;;  %p1197_p1 = por %p1196_p12, %p1195_p13 }
  0x29   : > { %p1198_p2 = pnand %p1197_p1, %p1191_p6 }
  0x2b   : > { %1201 = shalt.err (!%p1198_p2)
}
  0x2c   : > { %s1202_s5 = scalar_lea.vmem %s1484_s10, 8192  ;;  %s1365_s22 = smov [#allocation5]  }
  0x2d   : > { %p1203_p3 = scmp.ne.s32.totalorder %s1484_s10, %s1202_s5  ;;  %s1207_s23 = sshll.u32 %s1365_s22, 4  ;;  %s1208_s23 = int_to_ptr.vmem [resolvable:$false] %s1207_s23 }
  0x2e   : > { %s1209_s7 = scalar_lea.vmem %s1208_s23, 16384  ;;  %p1210_p9 = scmp.lt.s32.totalorder %s1484_s10, %s1208_s23 }
  0x2f   : > { %p1205_p5 = pnand %p1203_p3, %p1493_p4  ;;  %p1211_p8 = scmp.lt.s32.totalorder %s1209_s7, %s1202_s5 }
  0x31   : > { %p1206_p11 = pneg %p1205_p5  ;;  %p1212_p7 = por %p1211_p8, %p1210_p9 }
  0x33   : > { %p1213_p10 = pnand %p1212_p7, %p1206_p11 }
  0x35   : > { %1216 = shalt.err (!%p1213_p10)
}
  0x36   : > { %s1949_s19 = smov 256   ;;  %s1951_s6 = smov 16  }
  0x37   : > { %1125 = dma.hbm_to_vmem [thread:$0]  (!%p1471_p0), %s1480_s8, 8192, %s1484_s10, %s1487_s11, %s1949_s19, %s1949_s19, %s1951_s6  }
  0x38   : > { %p1966_p8 = scmp.lt.s32.totalorder %s1363_s17, 3  ;;  %p1967_p9 = scmp.ge.s32.totalorder %s1363_s17, 1 }
  0x39   : > { %s1532_s23 = scalar_lea.hbm %s1942_s0, %s1467_s30  ;;  %s179_s7 = scalar_lea.vmem [#allocation2], %s1464_s29 }
  0x3a   : > { %p1524_p11 = pnand %p1967_p9, %p1966_p8  ;;  %s191_s28 = sshll.u32 %s179_s7, 4  ;;  %s1535_s28 = int_to_ptr.vmem [resolvable:$true] %s191_s28 }
  0x3b   : > { %s1541_s19 = scalar_lea.hbm %s1944_s2, %s1467_s30  ;;  %s1969_s6 = sand.u32 1, %s1351_s14  }
  0x3c   : > { %s1968_s9 = scalar_select %p1524_p11, 1, 0 }
  0x3d   : > { %s1545_s1 = scalar_lea.sflag [#allocation3], %s1969_s6  ;;  %s1217_s20 = scalar_lea.hbm %s1532_s23, 8192 }
  0x3e   : > { %p1218_p12 = scmp.ne.s32.totalorder %s1532_s23, %s1217_s20  ;;  %s1222_s16 = scalar_lea.hbm %s1942_s0, 16384 }
  0x3f   : > { %p1223_p6 = scmp.lt.u32.totalorder %s1532_s23, %s1942_s0  ;;  %p1224_p13 = scmp.lt.u32.totalorder %s1222_s16, %s1217_s20 }
  0x40   : > { %p1220_p1 = pnand %p1218_p12, %p1493_p4  ;;  %p1226_p5 = scmp.lt.u32.totalorder %s1217_s20, %s1532_s23 }
  0x41   : > { %p1225_p3 = por %p1224_p13, %p1223_p6 }
  0x42   : > { %p1221_p2 = pneg %p1220_p1 }
  0x43   : > { %p1227_p7 = por %p1226_p5, %p1225_p3 }
  0x45   : > { %p1228_p10 = pnand %p1227_p7, %p1221_p2 }
  0x47   : > { %1231 = shalt.err (!%p1228_p10)
}
  0x48   : > { %s1232_s30 = scalar_lea.vmem %s1535_s28, 8192  ;;  %s1368_s6 = smov [#allocation2]  }
  0x49   : > { %p1233_p8 = scmp.ne.s32.totalorder %s1535_s28, %s1232_s30  ;;  %s1237_s8 = sshll.u32 %s1368_s6, 4  ;;  %s1238_s8 = int_to_ptr.vmem [resolvable:$false] %s1237_s8 }
  0x4a   : > { %s1239_s26 = scalar_lea.vmem %s1238_s8, 16384  ;;  %p1240_p1 = scmp.lt.s32.totalorder %s1535_s28, %s1238_s8 }
  0x4b   : > { %p1235_p9 = pnand %p1233_p8, %p1493_p4  ;;  %p1241_p11 = scmp.lt.s32.totalorder %s1239_s26, %s1232_s30 }
  0x4d   : > { %p1236_p12 = pneg %p1235_p9  ;;  %p1242_p6 = por %p1241_p11, %p1240_p1 }
  0x4f   : > { %p1243_p13 = pnand %p1242_p6, %p1236_p12 }
  0x51   : > { %1246 = shalt.err (!%p1243_p13)
}
  0x52   : > { %s1970_s16 = smov 16   ;;  %s1971_s20 = smov 256  }
  0x53   : > { %1122 = dma.hbm_to_vmem [thread:$0]  (!%p1471_p0), %s1532_s23, 8192, %s1535_s28, %s1545_s1, %s1971_s20, %s1971_s20, %s1970_s16  }
  0x54   : > { %s229_s10 = scalar_lea.vmem [#allocation7], %s1464_s29  ;;  %s1247_s22 = scalar_lea.hbm %s1541_s19, 8192 }
  0x55   : > { %s238_s5 = sshll.u32 %s229_s10, 4  ;;  %p1248_p11 = scmp.ne.s32.totalorder %s1541_s19, %s1247_s22  ;;  %s1573_s5 = int_to_ptr.vmem [resolvable:$true] %s238_s5 }
  0x56   : > { %s1252_s6 = scalar_lea.hbm %s1944_s2, 16384  ;;  %p1253_p5 = scmp.lt.u32.totalorder %s1541_s19, %s1944_s2 }
  0x57   : > { %p1250_p2 = pnand %p1248_p11, %p1493_p4  ;;  %p1254_p7 = scmp.lt.u32.totalorder %s1252_s6, %s1247_s22 }
  0x58   : > { %p1256_p8 = scmp.lt.u32.totalorder %s1247_s22, %s1541_s19 }
  0x59   : > { %p1251_p3 = pneg %p1250_p2  ;;  %p1255_p10 = por %p1254_p7, %p1253_p5 }
  0x5b   : > { %p1257_p9 = por %p1256_p8, %p1255_p10 }
  0x5d   : > { %p1258_p12 = pnand %p1257_p9, %p1251_p3 }
  0x5f   : > { %1261 = shalt.err (!%p1258_p12)
}
  0x60   : > { %s1262_s1 = scalar_lea.vmem %s1573_s5, 8192  ;;  %s1369_s28 = smov [#allocation7]  }
  0x61   : > { %p1263_p1 = scmp.ne.s32.totalorder %s1573_s5, %s1262_s1  ;;  %s1267_s29 = sshll.u32 %s1369_s28, 4  ;;  %s1268_s29 = int_to_ptr.vmem [resolvable:$false] %s1267_s29 }
  0x62   : > { %s1269_s23 = scalar_lea.vmem %s1268_s29, 16384  ;;  %p1270_p11 = scmp.lt.s32.totalorder %s1573_s5, %s1268_s29 }
  0x63   : > { %p1265_p6 = pnand %p1263_p1, %p1493_p4  ;;  %p1271_p2 = scmp.lt.s32.totalorder %s1269_s23, %s1262_s1 }
  0x65   : > { %p1266_p13 = pneg %p1265_p6  ;;  %p1272_p5 = por %p1271_p2, %p1270_p11 }
  0x67   : > { %p1273_p7 = pnand %p1272_p5, %p1266_p13 }
  0x69   : > { %1276 = shalt.err (!%p1273_p7)
}
  0x6a   : > { %1128 = dma.hbm_to_vmem [thread:$0]  (!%p1471_p0), %s1541_s19, 8192, %s1573_s5, %s1487_s11, %s1971_s20, %s1971_s20, %s1970_s16  }
  0x6b   : > { %p1972_p4 = scmp.ne.s32.totalorder %s1968_s9, 0 }
  0x6c   : > { %s1603_s21 = sand.u32 (!%p1972_p4), 1, %s1347_s13   ;;  %p1973_p3 = scmp.ne.s32.totalorder (!%p1972_p4), %s1959_s24, 0 }
  0x6d   : > { %250 = sbr.rel (%p1972_p4) target bundleno = 478 (0x1de), region = 32  ;;  %s1606_s10 = sshll.u32 (!%p1972_p4), %s1603_s21, 9 }
  0x6e   : > { %s253_s4 = scalar_lea.sflag (!%p1972_p4), [#allocation3], %s1603_s21  ;;  %s1610_s22 = scalar_lea.vmem (!%p1972_p4), [#allocation2], %s1606_s10 }
  0x74   : > { %1330 = dma.done.wait (%p1973_p3), %s253_s4, 8192  }
  0x75   : > { %1332 = vsyncadd (%p1973_p3), %s253_s4, 4294959104  ;;  %s261_s11 = sand.u32 1, %s1424_s18   ;;  %s1618_s9 = scalar_lea.vmem [#allocation5], %s1606_s10 }
  0x76   : > { %s262_s19 = scalar_lea.sflag [#allocation6], %s261_s11 }
  0x77   : > { %1334 = dma.done.wait (%p1973_p3), %s262_s19, 16384  }
  0x78   : > { %1336 = vsyncadd (%p1973_p3), %s262_s19, 4294950912  ;;  %s1625_s16 = scalar_lea.vmem [#allocation7], %s1606_s10  ;;  %v314_v41 = vld [vmem:[%s1618_s9 + $0x8] sm:$0xff]  ;;  %s1762_s18 = scalar_lea.vmem [#allocation8], %s1606_s10 }
  0x79   : > { %v378_v0 = vld [vmem:[%s1625_s16 + $0x8] sm:$0xff]  ;;  %v380_v1 = vld [vmem:[%s1625_s16 + $0x18] sm:$0xff]  ;;  %v377_v2 = vld [vmem:[%s1625_s16] sm:$0xff]  ;;  %569 = vmatprep.mubr.f32.mxu0 %v314_v41  ;;  %s1014_s24 = sshll.u32 %s1355_s15, 13  ;;  %s845_s20 = sshll.u32 %s1762_s18, 4  ;;  %s1889_s20 = int_to_ptr.vmem [resolvable:$true] %s845_s20 }
  0x7a   : > { %v1015_v3 = vpack.c.bf16 %v380_v1, %v378_v0  ;;  %v379_v4 = vld [vmem:[%s1625_s16 + $0x10] sm:$0xff]  ;;  %v382_v5 = vld [vmem:[%s1625_s16 + $0x28] sm:$0xff]  ;;  %v384_v6 = vld [vmem:[%s1625_s16 + $0x38] sm:$0xff]  ;;  %s1887_s7 = scalar_lea.hbm %s1945_s3, %s1014_s24  ;;  %s827_s30 = scalar_lea.sflag [#allocation4], %s1603_s21 }
  0x7b   : > { %v1017_v7 = vpack.c.bf16 %v379_v4, %v377_v2  ;;  %v1019_v8 = vpack.c.bf16 %v384_v6, %v382_v5  ;;  %v381_v9 = vld [vmem:[%s1625_s16 + $0x20] sm:$0xff]  ;;  %v383_v10 = vld [vmem:[%s1625_s16 + $0x30] sm:$0xff]  ;;  %v386_v11 = vld [vmem:[%s1625_s16 + $0x48] sm:$0xff]  ;;  %s1277_s6 = scalar_lea.vmem %s1889_s20, 8192  ;;  %p1974_p10 = scmp.ne.s32.totalorder %s1960_s25, 0 }
  0x7c   : > { %1016 = vmatprep.subr.bf16.mxu0 %v1015_v3  ;;  %1079 = vmatprep.subr.bf16.mxu1 %v1015_v3  ;;  %v388_v12 = vld [vmem:[%s1625_s16 + $0x58] sm:$0xff]  ;;  %v1021_v13 = vpack.c.bf16 %v383_v10, %v381_v9  ;;  %v385_v15 = vld [vmem:[%s1625_s16 + $0x40] sm:$0xff]  ;;  %v387_v16 = vld [vmem:[%s1625_s16 + $0x50] sm:$0xff]  ;;  %p1278_p0 = scmp.ne.s32.totalorder %s1889_s20, %s1277_s6  ;;  %s1370_s8 = smov [#allocation8]  }
  0x7d   : > { %1018 = vmatpush1.bf16.msra.mxu0 %v1017_v7  ;;  %1095 = vmatpush1.bf16.msra.mxu1 %v1017_v7  ;;  %v1023_v14 = vpack.c.bf16 %v388_v12, %v386_v11  ;;  %v390_v17 = vld [vmem:[%s1625_s16 + $0x68] sm:$0xff]  ;;  %v392_v18 = vld [vmem:[%s1625_s16 + $0x78] sm:$0xff]  ;;  %v1025_v19 = vpack.c.bf16 %v387_v16, %v385_v15  ;;  %v389_v21 = vld [vmem:[%s1625_s16 + $0x60] sm:$0xff]  ;;  %s1281_s26 = sshll.u32 %s1370_s8, 4  ;;  %s1282_s26 = int_to_ptr.vmem [resolvable:$false] %s1281_s26 }
  0x7e   : > { %1020 = vmatprep.subr.bf16.mxu0 %v1019_v8  ;;  %1080 = vmatprep.subr.bf16.mxu1 %v1019_v8  ;;  %v1027_v20 = vpack.c.bf16 %v392_v18, %v390_v17  ;;  %v391_v22 = vld [vmem:[%s1625_s16 + $0x70] sm:$0xff]  ;;  %v394_v23 = vld [vmem:[%s1625_s16 + $0x88] sm:$0xff]  ;;  %v396_v24 = vld [vmem:[%s1625_s16 + $0x98] sm:$0xff]  ;;  %p1279_p8 = pnand %p1278_p0, %p1974_p10  ;;  %s1283_s1 = scalar_lea.vmem %s1282_s26, 16384 }
  0x7f   : > { %v1029_v25 = vpack.c.bf16 %v391_v22, %v389_v21  ;;  %v1031_v26 = vpack.c.bf16 %v396_v24, %v394_v23  ;;  %v393_v27 = vld [vmem:[%s1625_s16 + $0x80] sm:$0xff]  ;;  %v395_v28 = vld [vmem:[%s1625_s16 + $0x90] sm:$0xff]  ;;  %v398_v29 = vld [vmem:[%s1625_s16 + $0xa8] sm:$0xff]  ;;  %p1284_p12 = scmp.lt.s32.totalorder %s1889_s20, %s1282_s26  ;;  %p1285_p1 = scmp.lt.s32.totalorder %s1283_s1, %s1277_s6 }
  0x80   : > { %v400_v30 = vld [vmem:[%s1625_s16 + $0xb8] sm:$0xff]  ;;  %v1033_v31 = vpack.c.bf16 %v395_v28, %v393_v27  ;;  %v397_v33 = vld [vmem:[%s1625_s16 + $0xa0] sm:$0xff]  ;;  %v399_v34 = vld [vmem:[%s1625_s16 + $0xb0] sm:$0xff]  ;;  %p1280_p9 = pneg %p1279_p8 }
  0x81   : > { %1022 = vmatpush1.bf16.msra.mxu0 %v1021_v13  ;;  %1096 = vmatpush1.bf16.msra.mxu1 %v1021_v13  ;;  %v1035_v32 = vpack.c.bf16 %v400_v30, %v398_v29  ;;  %v402_v35 = vld [vmem:[%s1625_s16 + $0xc8] sm:$0xff]  ;;  %v404_v36 = vld [vmem:[%s1625_s16 + $0xd8] sm:$0xff]  ;;  %v1037_v37 = vpack.c.bf16 %v399_v34, %v397_v33  ;;  %v401_v38 = vld [vmem:[%s1625_s16 + $0xc0] sm:$0xff]  ;;  %p1286_p6 = por %p1285_p1, %p1284_p12 }
  0x82   : > { %1024 = vmatprep.subr.bf16.mxu0 %v1023_v14  ;;  %1081 = vmatprep.subr.bf16.mxu1 %v1023_v14  ;;  %v1039_v39 = vpack.c.bf16 %v404_v36, %v402_v35  ;;  %v403_v40 = vld [vmem:[%s1625_s16 + $0xd0] sm:$0xff]  ;;  %v346_v42 = vld [vmem:[%s1618_s9 + $0x108] sm:$0xff]  ;;  %v408_v44 = vld [vmem:[%s1625_s16 + $0xf8] sm:$0xff] }
  0x83   : > { %v406_v43 = vld [vmem:[%s1625_s16 + $0xe8] sm:$0xff]  ;;  %665 = vmatprep.mubr.f32.mxu1 %v346_v42  ;;  %v1041_v45 = vpack.c.bf16 %v403_v40, %v401_v38  ;;  %v405_v47 = vld [vmem:[%s1625_s16 + $0xe0] sm:$0xff]  ;;  %v407_v48 = vld [vmem:[%s1625_s16 + $0xf0] sm:$0xff]  ;;  %p1287_p13 = pnand %p1286_p6, %p1280_p9 }
  0x84   : > { %v1043_v46 = vpack.c.bf16 %v408_v44, %v406_v43  ;;  %v410_v49 = vld [vmem:[%s1625_s16 + $0x108] sm:$0xff]  ;;  %v412_v50 = vld [vmem:[%s1625_s16 + $0x118] sm:$0xff]  ;;  %v1045_v51 = vpack.c.bf16 %v407_v48, %v405_v47  ;;  %v409_v53 = vld [vmem:[%s1625_s16 + $0x100] sm:$0xff] }
  0x85   : > { %1026 = vmatpush1.bf16.msra.mxu0 %v1025_v19  ;;  %1097 = vmatpush1.bf16.msra.mxu1 %v1025_v19  ;;  %v1047_v52 = vpack.c.bf16 %v412_v50, %v410_v49  ;;  %v411_v54 = vld [vmem:[%s1625_s16 + $0x110] sm:$0xff]  ;;  %v414_v55 = vld [vmem:[%s1625_s16 + $0x128] sm:$0xff]  ;;  %v416_v56 = vld [vmem:[%s1625_s16 + $0x138] sm:$0xff] }
  0x86   : > { %1028 = vmatprep.subr.bf16.mxu0 %v1027_v20  ;;  %1082 = vmatprep.subr.bf16.mxu1 %v1027_v20  ;;  %v1049_v57 = vpack.c.bf16 %v411_v54, %v409_v53  ;;  %v1051_v58 = vpack.c.bf16 %v416_v56, %v414_v55  ;;  %v413_v59 = vld [vmem:[%s1625_s16 + $0x120] sm:$0xff]  ;;  %v415_v60 = vld [vmem:[%s1625_s16 + $0x130] sm:$0xff]  ;;  %v418_v61 = vld [vmem:[%s1625_s16 + $0x148] sm:$0xff] }
  0x87   : > { %v420_v62 = vld [vmem:[%s1625_s16 + $0x158] sm:$0xff]  ;;  %v1053_v63 = vpack.c.bf16 %v415_v60, %v413_v59  ;;  %v417_v1 = vld [vmem:[%s1625_s16 + $0x140] sm:$0xff]  ;;  %v419_v2 = vld [vmem:[%s1625_s16 + $0x150] sm:$0xff] }
  0x88   : > { %v1055_v0 = vpack.c.bf16 %v420_v62, %v418_v61  ;;  %v422_v3 = vld [vmem:[%s1625_s16 + $0x168] sm:$0xff]  ;;  %v424_v4 = vld [vmem:[%s1625_s16 + $0x178] sm:$0xff]  ;;  %v1057_v5 = vpack.c.bf16 %v419_v2, %v417_v1  ;;  %v421_v7 = vld [vmem:[%s1625_s16 + $0x160] sm:$0xff] }
  0x89   : > { %1030 = vmatpush1.bf16.msra.mxu0 %v1029_v25  ;;  %1098 = vmatpush1.bf16.msra.mxu1 %v1029_v25  ;;  %v1059_v6 = vpack.c.bf16 %v424_v4, %v422_v3  ;;  %v423_v8 = vld [vmem:[%s1625_s16 + $0x170] sm:$0xff]  ;;  %v426_v9 = vld [vmem:[%s1625_s16 + $0x188] sm:$0xff]  ;;  %v428_v10 = vld [vmem:[%s1625_s16 + $0x198] sm:$0xff] }
  0x8a   : > { %1032 = vmatprep.subr.bf16.mxu0 %v1031_v26  ;;  %1083 = vmatprep.subr.bf16.mxu1 %v1031_v26  ;;  %v1061_v11 = vpack.c.bf16 %v423_v8, %v421_v7  ;;  %v1063_v12 = vpack.c.bf16 %v428_v10, %v426_v9  ;;  %v425_v13 = vld [vmem:[%s1625_s16 + $0x180] sm:$0xff]  ;;  %v427_v14 = vld [vmem:[%s1625_s16 + $0x190] sm:$0xff]  ;;  %v430_v15 = vld [vmem:[%s1625_s16 + $0x1a8] sm:$0xff] }
  0x8b   : > { %v432_v16 = vld [vmem:[%s1625_s16 + $0x1b8] sm:$0xff]  ;;  %v1065_v17 = vpack.c.bf16 %v427_v14, %v425_v13  ;;  %v429_v19 = vld [vmem:[%s1625_s16 + $0x1a0] sm:$0xff]  ;;  %v431_v20 = vld [vmem:[%s1625_s16 + $0x1b0] sm:$0xff] }
  0x8c   : > { %v1067_v18 = vpack.c.bf16 %v432_v16, %v430_v15  ;;  %v434_v21 = vld [vmem:[%s1625_s16 + $0x1c8] sm:$0xff]  ;;  %v436_v22 = vld [vmem:[%s1625_s16 + $0x1d8] sm:$0xff]  ;;  %v1069_v23 = vpack.c.bf16 %v431_v20, %v429_v19  ;;  %v433_v25 = vld [vmem:[%s1625_s16 + $0x1c0] sm:$0xff] }
  0x8d   : > { %1034 = vmatpush1.bf16.msra.mxu0 %v1033_v31  ;;  %1099 = vmatpush1.bf16.msra.mxu1 %v1033_v31  ;;  %v1071_v24 = vpack.c.bf16 %v436_v22, %v434_v21  ;;  %v435_v26 = vld [vmem:[%s1625_s16 + $0x1d0] sm:$0xff]  ;;  %v438_v27 = vld [vmem:[%s1625_s16 + $0x1e8] sm:$0xff]  ;;  %v440_v28 = vld [vmem:[%s1625_s16 + $0x1f8] sm:$0xff] }
  0x8e   : > { %1036 = vmatprep.subr.bf16.mxu0 %v1035_v32  ;;  %1084 = vmatprep.subr.bf16.mxu1 %v1035_v32  ;;  %v1073_v29 = vpack.c.bf16 %v435_v26, %v433_v25  ;;  %v1075_v30 = vpack.c.bf16 %v440_v28, %v438_v27  ;;  %v437_v31 = vld [vmem:[%s1625_s16 + $0x1e0] sm:$0xff]  ;;  %v439_v32 = vld [vmem:[%s1625_s16 + $0x1f0] sm:$0xff]  ;;  %v316_v36 = vld [vmem:[%s1618_s9 + $0x18] sm:$0xff] }
  0x8f   : > { %v1077_v33 = vpack.c.bf16 %v439_v32, %v437_v31  ;;  %v313_v34 = vld [vmem:[%s1618_s9] sm:$0xff]  ;;  %v315_v38 = vld [vmem:[%s1618_s9 + $0x10] sm:$0xff]  ;;  %v318_v40 = vld [vmem:[%s1618_s9 + $0x28] sm:$0xff] }
  0x90   : > { %v345_v35 = vld [vmem:[%s1618_s9 + $0x100] sm:$0xff]  ;;  %v350_v41 = vld [vmem:[%s1618_s9 + $0x128] sm:$0xff]  ;;  %v320_v44 = vld [vmem:[%s1618_s9 + $0x38] sm:$0xff] }
  0x91   : > { %1038 = vmatpush1.bf16.msra.mxu0 %v1037_v37  ;;  %1100 = vmatpush1.bf16.msra.mxu1 %v1037_v37  ;;  %v348_v37 = vld [vmem:[%s1618_s9 + $0x118] sm:$0xff]  ;;  %v317_v42 = vld [vmem:[%s1618_s9 + $0x20] sm:$0xff]  ;;  %v351_v47 = vld [vmem:[%s1618_s9 + $0x130] sm:$0xff] }
  0x92   : > { %1040 = vmatprep.subr.bf16.mxu0 %v1039_v39  ;;  %1085 = vmatprep.subr.bf16.mxu1 %v1039_v39  ;;  %v347_v39 = vld [vmem:[%s1618_s9 + $0x110] sm:$0xff]  ;;  %v349_v43 = vld [vmem:[%s1618_s9 + $0x120] sm:$0xff]  ;;  %v322_v48 = vld [vmem:[%s1618_s9 + $0x48] sm:$0xff] }
  0x93   : > { %v354_v49 = vld [vmem:[%s1618_s9 + $0x148] sm:$0xff]  ;;  %v321_v50 = vld [vmem:[%s1618_s9 + $0x40] sm:$0xff]  ;;  %v356_v53 = vld [vmem:[%s1618_s9 + $0x158] sm:$0xff] }
  0x94   : > { %v323_v54 = vld [vmem:[%s1618_s9 + $0x50] sm:$0xff]  ;;  %v326_v56 = vld [vmem:[%s1618_s9 + $0x68] sm:$0xff]  ;;  %v357_v59 = vld [vmem:[%s1618_s9 + $0x160] sm:$0xff] }
  0x95   : > { %1042 = vmatpush1.bf16.msra.mxu0 %v1041_v45  ;;  %1101 = vmatpush1.bf16.msra.mxu1 %v1041_v45  ;;  %v352_v45 = vld [vmem:[%s1618_s9 + $0x138] sm:$0xff]  ;;  %v355_v55 = vld [vmem:[%s1618_s9 + $0x150] sm:$0xff]  ;;  %v362_v1 = vld [vmem:[%s1618_s9 + $0x188] sm:$0xff] }
  0x96   : > { %1044 = vmatprep.subr.bf16.mxu0 %v1043_v46  ;;  %1086 = vmatprep.subr.bf16.mxu1 %v1043_v46  ;;  %v319_v46 = vld [vmem:[%s1618_s9 + $0x30] sm:$0xff]  ;;  %v328_v60 = vld [vmem:[%s1618_s9 + $0x78] sm:$0xff]  ;;  %v329_v2 = vld [vmem:[%s1618_s9 + $0x80] sm:$0xff] }
  0x97   : > { %v360_v61 = vld [vmem:[%s1618_s9 + $0x178] sm:$0xff]  ;;  %v327_v62 = vld [vmem:[%s1618_s9 + $0x70] sm:$0xff]  ;;  %v361_v3 = vld [vmem:[%s1618_s9 + $0x180] sm:$0xff] }
  0x98   : > { %v332_v4 = vld [vmem:[%s1618_s9 + $0x98] sm:$0xff]  ;;  %v363_v7 = vld [vmem:[%s1618_s9 + $0x190] sm:$0xff]  ;;  %v334_v8 = vld [vmem:[%s1618_s9 + $0xa8] sm:$0xff] }
  0x99   : > { %1046 = vmatpush1.bf16.msra.mxu0 %v1045_v51  ;;  %1102 = vmatpush1.bf16.msra.mxu1 %v1045_v51  ;;  %v353_v51 = vld [vmem:[%s1618_s9 + $0x140] sm:$0xff]  ;;  %v366_v9 = vld [vmem:[%s1618_s9 + $0x1a8] sm:$0xff]  ;;  %v368_v13 = vld [vmem:[%s1618_s9 + $0x1b8] sm:$0xff] }
  0x9a   : > { %1048 = vmatprep.subr.bf16.mxu0 %v1047_v52  ;;  %1087 = vmatprep.subr.bf16.mxu1 %v1047_v52  ;;  %v324_v52 = vld [vmem:[%s1618_s9 + $0x58] sm:$0xff]  ;;  %v333_v10 = vld [vmem:[%s1618_s9 + $0xa0] sm:$0xff]  ;;  %v335_v14 = vld [vmem:[%s1618_s9 + $0xb0] sm:$0xff] }
  0x9b   : > { %v367_v15 = vld [vmem:[%s1618_s9 + $0x1b0] sm:$0xff]  ;;  %v338_v16 = vld [vmem:[%s1618_s9 + $0xc8] sm:$0xff]  ;;  %v369_v19 = vld [vmem:[%s1618_s9 + $0x1c0] sm:$0xff] }
  0x9c   : > { %v340_v20 = vld [vmem:[%s1618_s9 + $0xd8] sm:$0xff]  ;;  %v339_v22 = vld [vmem:[%s1618_s9 + $0xd0] sm:$0xff]  ;;  %v374_v25 = vld [vmem:[%s1618_s9 + $0x1e8] sm:$0xff] }
  0x9d   : > { %1050 = vmatpush1.bf16.msra.mxu0 %v1049_v57  ;;  %1103 = vmatpush1.bf16.msra.mxu1 %v1049_v57  ;;  %v358_v57 = vld [vmem:[%s1618_s9 + $0x168] sm:$0xff]  ;;  %v372_v21 = vld [vmem:[%s1618_s9 + $0x1d8] sm:$0xff]  ;;  %v341_v26 = vld [vmem:[%s1618_s9 + $0xe0] sm:$0xff] }
  0x9e   : > { %1052 = vmatprep.subr.bf16.mxu0 %v1051_v58  ;;  %1088 = vmatprep.subr.bf16.mxu1 %v1051_v58  ;;  %v325_v58 = vld [vmem:[%s1618_s9 + $0x60] sm:$0xff]  ;;  %v344_v28 = vld [vmem:[%s1618_s9 + $0xf8] sm:$0xff]  ;;  %v375_v31 = vld [vmem:[%s1618_s9 + $0x1f0] sm:$0xff] }
  0x9f   : > { %v373_v27 = vld [vmem:[%s1618_s9 + $0x1e0] sm:$0xff] }
  0xa0   : > { %v441_v32 = vld [vmem:[%s1610_s22] sm:$0xff] }
  0xa1   : > { %1054 = vmatpush1.bf16.msra.mxu0 %v1053_v63  ;;  %1104 = vmatpush1.bf16.msra.mxu1 %v1053_v63  ;;  %v359_v63 = vld [vmem:[%s1618_s9 + $0x170] sm:$0xff] }
  0xa2   : > { %1056 = vmatprep.subr.bf16.mxu0 %v1055_v0  ;;  %1089 = vmatprep.subr.bf16.mxu1 %v1055_v0  ;;  %v330_v0 = vld [vmem:[%s1618_s9 + $0x88] sm:$0xff] }
  0xa5   : > { %1058 = vmatpush1.bf16.msra.mxu0 %v1057_v5  ;;  %1105 = vmatpush1.bf16.msra.mxu1 %v1057_v5  ;;  %v364_v5 = vld [vmem:[%s1618_s9 + $0x198] sm:$0xff] }
  0xa6   : > { %1060 = vmatprep.subr.bf16.mxu0 %v1059_v6  ;;  %1090 = vmatprep.subr.bf16.mxu1 %v1059_v6  ;;  %v331_v6 = vld [vmem:[%s1618_s9 + $0x90] sm:$0xff] }
  0xa9   : > { %1062 = vmatpush1.bf16.msra.mxu0 %v1061_v11  ;;  %1106 = vmatpush1.bf16.msra.mxu1 %v1061_v11  ;;  %v365_v11 = vld [vmem:[%s1618_s9 + $0x1a0] sm:$0xff] }
  0xaa   : > { %1064 = vmatprep.subr.bf16.mxu0 %v1063_v12  ;;  %1091 = vmatprep.subr.bf16.mxu1 %v1063_v12  ;;  %v336_v12 = vld [vmem:[%s1618_s9 + $0xb8] sm:$0xff] }
  0xad   : > { %1066 = vmatpush1.bf16.msra.mxu0 %v1065_v17  ;;  %1107 = vmatpush1.bf16.msra.mxu1 %v1065_v17  ;;  %v370_v17 = vld [vmem:[%s1618_s9 + $0x1c8] sm:$0xff] }
  0xae   : > { %1068 = vmatprep.subr.bf16.mxu0 %v1067_v18  ;;  %1092 = vmatprep.subr.bf16.mxu1 %v1067_v18  ;;  %v337_v18 = vld [vmem:[%s1618_s9 + $0xc0] sm:$0xff] }
  0xb1   : > { %1070 = vmatpush1.bf16.msra.mxu0 %v1069_v23  ;;  %1108 = vmatpush1.bf16.msra.mxu1 %v1069_v23  ;;  %v371_v23 = vld [vmem:[%s1618_s9 + $0x1d0] sm:$0xff] }
  0xb2   : > { %1072 = vmatprep.subr.bf16.mxu0 %v1071_v24  ;;  %1093 = vmatprep.subr.bf16.mxu1 %v1071_v24  ;;  %v342_v24 = vld [vmem:[%s1618_s9 + $0xe8] sm:$0xff] }
  0xb5   : > { %1074 = vmatpush1.bf16.msra.mxu0 %v1073_v29  ;;  %1109 = vmatpush1.bf16.msra.mxu1 %v1073_v29  ;;  %v376_v29 = vld [vmem:[%s1618_s9 + $0x1f8] sm:$0xff] }
  0xb6   : > { %1076 = vmatprep.subr.bf16.mxu0 %v1075_v30  ;;  %1094 = vmatprep.subr.bf16.mxu1 %v1075_v30  ;;  %v343_v30 = vld [vmem:[%s1618_s9 + $0xf0] sm:$0xff] }
  0xb9   : > { %1078 = vmatpush1.bf16.msra.mxu0 %v1077_v33  ;;  %1110 = vmatpush1.bf16.msra.mxu1 %v1077_v33  ;;  %v473_v33 = vld [vmem:[%s1610_s22 + $0x100] sm:$0xff] }
  0xbc   : > { %570 = vmatmul.mubr.f32.vlgmr.msra.gmra.mrb[0].mxu0 %v313_v34  ;;  %666 = vmatmul.mubr.f32.vlgmr.msra.gmra.mrb[0].mxu1 %v345_v35  ;;  %v442_v34 = vld [vmem:[%s1610_s22 + $0x8] sm:$0xff] }
  0xbd   : > { %575 = vmatprep.mubr.f32.mxu0 %v316_v36  ;;  %671 = vmatprep.mubr.f32.mxu1 %v348_v37  ;;  %v474_v35 = vld [vmem:[%s1610_s22 + $0x108] sm:$0xff] }
  0xc0   : > { %576 = vmatmul.mubr.f32.gmra.mrb[2].mxu0 %v315_v38  ;;  %672 = vmatmul.mubr.f32.gmra.mrb[2].mxu1 %v347_v39 }
  0xc1   : > { %581 = vmatprep.mubr.f32.mxu0 %v318_v40  ;;  %677 = vmatprep.mubr.f32.mxu1 %v350_v41 }
  0xc4   : > { %582 = vmatmul.mubr.f32.gmra.mrb[4].mxu0 %v317_v42  ;;  %678 = vmatmul.mubr.f32.gmra.mrb[4].mxu1 %v349_v43 }
  0xc5   : > { %587 = vmatprep.mubr.f32.mxu0 %v320_v44  ;;  %683 = vmatprep.mubr.f32.mxu1 %v352_v45  ;;  %v443_v44 = vld [vmem:[%s1610_s22 + $0x10] sm:$0xff] }
  0xc6   : > { %v475_v45 = vld [vmem:[%s1610_s22 + $0x110] sm:$0xff] }
  0xc8   : > { %588 = vmatmul.mubr.f32.gmra.mrb[6].mxu0 %v319_v46  ;;  %684 = vmatmul.mubr.f32.gmra.mrb[6].mxu1 %v351_v47  ;;  %v444_v46 = vld [vmem:[%s1610_s22 + $0x18] sm:$0xff] }
  0xc9   : > { %593 = vmatprep.mubr.f32.mxu0 %v322_v48  ;;  %689 = vmatprep.mubr.f32.mxu1 %v354_v49  ;;  %v476_v47 = vld [vmem:[%s1610_s22 + $0x118] sm:$0xff] }
  0xcc   : > { %594 = vmatmul.mubr.f32.gmra.mrb[8].mxu0 %v321_v50  ;;  %690 = vmatmul.mubr.f32.gmra.mrb[8].mxu1 %v353_v51 }
  0xcd   : > { %599 = vmatprep.mubr.f32.mxu0 %v324_v52  ;;  %695 = vmatprep.mubr.f32.mxu1 %v356_v53 }
  0xd0   : > { %600 = vmatmul.mubr.f32.gmra.mrb[10].mxu0 %v323_v54  ;;  %696 = vmatmul.mubr.f32.gmra.mrb[10].mxu1 %v355_v55 }
  0xd1   : > { %605 = vmatprep.mubr.f32.mxu0 %v326_v56  ;;  %701 = vmatprep.mubr.f32.mxu1 %v358_v57  ;;  %v445_v56 = vld [vmem:[%s1610_s22 + $0x20] sm:$0xff] }
  0xd2   : > { %v477_v57 = vld [vmem:[%s1610_s22 + $0x120] sm:$0xff] }
  0xd4   : > { %606 = vmatmul.mubr.f32.gmra.mrb[12].mxu0 %v325_v58  ;;  %702 = vmatmul.mubr.f32.gmra.mrb[12].mxu1 %v357_v59  ;;  %v446_v58 = vld [vmem:[%s1610_s22 + $0x28] sm:$0xff] }
  0xd5   : > { %611 = vmatprep.mubr.f32.mxu0 %v328_v60  ;;  %707 = vmatprep.mubr.f32.mxu1 %v360_v61  ;;  %v478_v59 = vld [vmem:[%s1610_s22 + $0x128] sm:$0xff] }
  0xd8   : > { %612 = vmatmul.mubr.f32.gmra.mrb[14].mxu0 %v327_v62  ;;  %708 = vmatmul.mubr.f32.gmra.mrb[14].mxu1 %v359_v63 }
  0xd9   : > { %617 = vmatprep.mubr.f32.mxu0 %v330_v0  ;;  %713 = vmatprep.mubr.f32.mxu1 %v362_v1 }
  0xdc   : > { %618 = vmatmul.mubr.f32.gmra.mrb[16].mxu0 %v329_v2  ;;  %714 = vmatmul.mubr.f32.gmra.mrb[16].mxu1 %v361_v3 }
  0xdd   : > { %623 = vmatprep.mubr.f32.mxu0 %v332_v4  ;;  %719 = vmatprep.mubr.f32.mxu1 %v364_v5  ;;  %v447_v4 = vld [vmem:[%s1610_s22 + $0x30] sm:$0xff] }
  0xde   : > { %v479_v5 = vld [vmem:[%s1610_s22 + $0x130] sm:$0xff] }
  0xe0   : > { %624 = vmatmul.mubr.f32.gmra.mrb[18].mxu0 %v331_v6  ;;  %720 = vmatmul.mubr.f32.gmra.mrb[18].mxu1 %v363_v7  ;;  %v448_v6 = vld [vmem:[%s1610_s22 + $0x38] sm:$0xff] }
  0xe1   : > { %629 = vmatprep.mubr.f32.mxu0 %v334_v8  ;;  %725 = vmatprep.mubr.f32.mxu1 %v366_v9  ;;  %v480_v7 = vld [vmem:[%s1610_s22 + $0x138] sm:$0xff] }
  0xe4   : > { %630 = vmatmul.mubr.f32.gmra.mrb[20].mxu0 %v333_v10  ;;  %726 = vmatmul.mubr.f32.gmra.mrb[20].mxu1 %v365_v11 }
  0xe5   : > { %635 = vmatprep.mubr.f32.mxu0 %v336_v12  ;;  %731 = vmatprep.mubr.f32.mxu1 %v368_v13 }
  0xe8   : > { %636 = vmatmul.mubr.f32.gmra.mrb[22].mxu0 %v335_v14  ;;  %732 = vmatmul.mubr.f32.gmra.mrb[22].mxu1 %v367_v15 }
  0xe9   : > { %641 = vmatprep.mubr.f32.mxu0 %v338_v16  ;;  %737 = vmatprep.mubr.f32.mxu1 %v370_v17  ;;  %v449_v16 = vld [vmem:[%s1610_s22 + $0x40] sm:$0xff] }
  0xea   : > { %v481_v17 = vld [vmem:[%s1610_s22 + $0x140] sm:$0xff] }
  0xec   : > { %642 = vmatmul.mubr.f32.gmra.mrb[24].mxu0 %v337_v18  ;;  %738 = vmatmul.mubr.f32.gmra.mrb[24].mxu1 %v369_v19  ;;  %v450_v18 = vld [vmem:[%s1610_s22 + $0x48] sm:$0xff] }
  0xed   : > { %647 = vmatprep.mubr.f32.mxu0 %v340_v20  ;;  %743 = vmatprep.mubr.f32.mxu1 %v372_v21  ;;  %v482_v19 = vld [vmem:[%s1610_s22 + $0x148] sm:$0xff] }
  0xf0   : > { %648 = vmatmul.mubr.f32.gmra.mrb[26].mxu0 %v339_v22  ;;  %744 = vmatmul.mubr.f32.gmra.mrb[26].mxu1 %v371_v23 }
  0xf1   : > { %653 = vmatprep.mubr.f32.mxu0 %v342_v24  ;;  %749 = vmatprep.mubr.f32.mxu1 %v374_v25 }
  0xf4   : > { %654 = vmatmul.mubr.f32.gmra.mrb[28].mxu0 %v341_v26  ;;  %750 = vmatmul.mubr.f32.gmra.mrb[28].mxu1 %v373_v27 }
  0xf5   : > { %659 = vmatprep.mubr.f32.mxu0 %v344_v28  ;;  %755 = vmatprep.mubr.f32.mxu1 %v376_v29  ;;  %v451_v28 = vld [vmem:[%s1610_s22 + $0x50] sm:$0xff] }
  0xf6   : > { %v483_v29 = vld [vmem:[%s1610_s22 + $0x150] sm:$0xff] }
  0xf8   : > { %660 = vmatmul.mubr.f32.gmra.mrb[30].mxu0 %v343_v30  ;;  %756 = vmatmul.mubr.f32.gmra.mrb[30].mxu1 %v375_v31  ;;  %v452_v30 = vld [vmem:[%s1610_s22 + $0x58] sm:$0xff] }
  0xf9   : > { %v484_v31 = vld [vmem:[%s1610_s22 + $0x158] sm:$0xff] }
 0x18f   : > { %v571_v36 = vpop.f32.mrb[0].mxu0  ;;  %v667_v37 = vpop.f32.mrb[0].mxu1 }
 0x190   : > { %v572_v38 = vadd.f32 %v571_v36, %v441_v32  ;;  %v668_v39 = vadd.f32 %v667_v37, %v473_v33  ;;  %v573_v40 = vpop.f32.mrb[1].mxu0  ;;  %v669_v41 = vpop.f32.mrb[1].mxu1 }
 0x191   : > { %v574_v42 = vadd.f32 %v573_v40, %v442_v34  ;;  %v670_v43 = vadd.f32 %v669_v41, %v474_v35  ;;  %v453_v40 = vld [vmem:[%s1610_s22 + $0x60] sm:$0xff] }
 0x192   : > { %762 = vst [vmem:[%s1762_s18] sm:$0xff] %v572_v38  ;;  %794 = vst [vmem:[%s1762_s18 + $0x100] sm:$0xff] %v668_v39  ;;  %v485_v41 = vld [vmem:[%s1610_s22 + $0x160] sm:$0xff] }
 0x193   : > { %763 = vst [vmem:[%s1762_s18 + $0x8] sm:$0xff] %v574_v42  ;;  %795 = vst [vmem:[%s1762_s18 + $0x108] sm:$0xff] %v670_v43  ;;  %v577_v48 = vpop.f32.mrb[2].mxu0  ;;  %v673_v49 = vpop.f32.mrb[2].mxu1  ;;  %v454_v42 = vld [vmem:[%s1610_s22 + $0x68] sm:$0xff] }
 0x194   : > { %v578_v50 = vadd.f32 %v577_v48, %v443_v44  ;;  %v674_v51 = vadd.f32 %v673_v49, %v475_v45  ;;  %v579_v52 = vpop.f32.mrb[3].mxu0  ;;  %v675_v53 = vpop.f32.mrb[3].mxu1  ;;  %v486_v43 = vld [vmem:[%s1610_s22 + $0x168] sm:$0xff] }
 0x195   : > { %v580_v54 = vadd.f32 %v579_v52, %v444_v46  ;;  %v676_v55 = vadd.f32 %v675_v53, %v476_v47  ;;  %v455_v52 = vld [vmem:[%s1610_s22 + $0x70] sm:$0xff] }
 0x196   : > { %764 = vst [vmem:[%s1762_s18 + $0x10] sm:$0xff] %v578_v50  ;;  %796 = vst [vmem:[%s1762_s18 + $0x110] sm:$0xff] %v674_v51  ;;  %v487_v53 = vld [vmem:[%s1610_s22 + $0x170] sm:$0xff] }
 0x197   : > { %765 = vst [vmem:[%s1762_s18 + $0x18] sm:$0xff] %v580_v54  ;;  %797 = vst [vmem:[%s1762_s18 + $0x118] sm:$0xff] %v676_v55  ;;  %v583_v60 = vpop.f32.mrb[4].mxu0  ;;  %v679_v61 = vpop.f32.mrb[4].mxu1  ;;  %v456_v54 = vld [vmem:[%s1610_s22 + $0x78] sm:$0xff] }
 0x198   : > { %v584_v62 = vadd.f32 %v583_v60, %v445_v56  ;;  %v680_v63 = vadd.f32 %v679_v61, %v477_v57  ;;  %v585_v0 = vpop.f32.mrb[5].mxu0  ;;  %v681_v1 = vpop.f32.mrb[5].mxu1  ;;  %v488_v55 = vld [vmem:[%s1610_s22 + $0x178] sm:$0xff] }
 0x199   : > { %v586_v2 = vadd.f32 %v585_v0, %v446_v58  ;;  %v682_v3 = vadd.f32 %v681_v1, %v478_v59  ;;  %v457_v0 = vld [vmem:[%s1610_s22 + $0x80] sm:$0xff] }
 0x19a   : > { %766 = vst [vmem:[%s1762_s18 + $0x20] sm:$0xff] %v584_v62  ;;  %798 = vst [vmem:[%s1762_s18 + $0x120] sm:$0xff] %v680_v63  ;;  %v489_v1 = vld [vmem:[%s1610_s22 + $0x180] sm:$0xff] }
 0x19b   : > { %767 = vst [vmem:[%s1762_s18 + $0x28] sm:$0xff] %v586_v2  ;;  %799 = vst [vmem:[%s1762_s18 + $0x128] sm:$0xff] %v682_v3  ;;  %v589_v8 = vpop.f32.mrb[6].mxu0  ;;  %v685_v9 = vpop.f32.mrb[6].mxu1  ;;  %v458_v2 = vld [vmem:[%s1610_s22 + $0x88] sm:$0xff] }
 0x19c   : > { %v590_v10 = vadd.f32 %v589_v8, %v447_v4  ;;  %v686_v11 = vadd.f32 %v685_v9, %v479_v5  ;;  %v591_v12 = vpop.f32.mrb[7].mxu0  ;;  %v687_v13 = vpop.f32.mrb[7].mxu1  ;;  %v490_v3 = vld [vmem:[%s1610_s22 + $0x188] sm:$0xff] }
 0x19d   : > { %v592_v14 = vadd.f32 %v591_v12, %v448_v6  ;;  %v688_v15 = vadd.f32 %v687_v13, %v480_v7  ;;  %v459_v12 = vld [vmem:[%s1610_s22 + $0x90] sm:$0xff] }
 0x19e   : > { %768 = vst [vmem:[%s1762_s18 + $0x30] sm:$0xff] %v590_v10  ;;  %800 = vst [vmem:[%s1762_s18 + $0x130] sm:$0xff] %v686_v11  ;;  %v491_v13 = vld [vmem:[%s1610_s22 + $0x190] sm:$0xff] }
 0x19f   : > { %769 = vst [vmem:[%s1762_s18 + $0x38] sm:$0xff] %v592_v14  ;;  %801 = vst [vmem:[%s1762_s18 + $0x138] sm:$0xff] %v688_v15  ;;  %v595_v20 = vpop.f32.mrb[8].mxu0  ;;  %v691_v21 = vpop.f32.mrb[8].mxu1  ;;  %v460_v14 = vld [vmem:[%s1610_s22 + $0x98] sm:$0xff] }
 0x1a0   : > { %v596_v22 = vadd.f32 %v595_v20, %v449_v16  ;;  %v692_v23 = vadd.f32 %v691_v21, %v481_v17  ;;  %v597_v24 = vpop.f32.mrb[9].mxu0  ;;  %v693_v25 = vpop.f32.mrb[9].mxu1  ;;  %v492_v15 = vld [vmem:[%s1610_s22 + $0x198] sm:$0xff] }
 0x1a1   : > { %v598_v26 = vadd.f32 %v597_v24, %v450_v18  ;;  %v694_v27 = vadd.f32 %v693_v25, %v482_v19  ;;  %v461_v24 = vld [vmem:[%s1610_s22 + $0xa0] sm:$0xff] }
 0x1a2   : > { %770 = vst [vmem:[%s1762_s18 + $0x40] sm:$0xff] %v596_v22  ;;  %802 = vst [vmem:[%s1762_s18 + $0x140] sm:$0xff] %v692_v23  ;;  %v493_v25 = vld [vmem:[%s1610_s22 + $0x1a0] sm:$0xff] }
 0x1a3   : > { %771 = vst [vmem:[%s1762_s18 + $0x48] sm:$0xff] %v598_v26  ;;  %803 = vst [vmem:[%s1762_s18 + $0x148] sm:$0xff] %v694_v27  ;;  %v601_v32 = vpop.f32.mrb[10].mxu0  ;;  %v697_v33 = vpop.f32.mrb[10].mxu1  ;;  %v462_v26 = vld [vmem:[%s1610_s22 + $0xa8] sm:$0xff] }
 0x1a4   : > { %v602_v34 = vadd.f32 %v601_v32, %v451_v28  ;;  %v698_v35 = vadd.f32 %v697_v33, %v483_v29  ;;  %v603_v36 = vpop.f32.mrb[11].mxu0  ;;  %v699_v37 = vpop.f32.mrb[11].mxu1  ;;  %v494_v27 = vld [vmem:[%s1610_s22 + $0x1a8] sm:$0xff] }
 0x1a5   : > { %v604_v38 = vadd.f32 %v603_v36, %v452_v30  ;;  %v700_v39 = vadd.f32 %v699_v37, %v484_v31  ;;  %v463_v36 = vld [vmem:[%s1610_s22 + $0xb0] sm:$0xff] }
 0x1a6   : > { %772 = vst [vmem:[%s1762_s18 + $0x50] sm:$0xff] %v602_v34  ;;  %804 = vst [vmem:[%s1762_s18 + $0x150] sm:$0xff] %v698_v35  ;;  %v495_v37 = vld [vmem:[%s1610_s22 + $0x1b0] sm:$0xff] }
 0x1a7   : > { %773 = vst [vmem:[%s1762_s18 + $0x58] sm:$0xff] %v604_v38  ;;  %805 = vst [vmem:[%s1762_s18 + $0x158] sm:$0xff] %v700_v39  ;;  %v607_v44 = vpop.f32.mrb[12].mxu0  ;;  %v703_v45 = vpop.f32.mrb[12].mxu1  ;;  %v464_v38 = vld [vmem:[%s1610_s22 + $0xb8] sm:$0xff] }
 0x1a8   : > { %v608_v46 = vadd.f32 %v607_v44, %v453_v40  ;;  %v704_v47 = vadd.f32 %v703_v45, %v485_v41  ;;  %v609_v48 = vpop.f32.mrb[13].mxu0  ;;  %v705_v49 = vpop.f32.mrb[13].mxu1  ;;  %v496_v39 = vld [vmem:[%s1610_s22 + $0x1b8] sm:$0xff] }
 0x1a9   : > { %v610_v50 = vadd.f32 %v609_v48, %v454_v42  ;;  %v706_v51 = vadd.f32 %v705_v49, %v486_v43  ;;  %v465_v48 = vld [vmem:[%s1610_s22 + $0xc0] sm:$0xff] }
 0x1aa   : > { %774 = vst [vmem:[%s1762_s18 + $0x60] sm:$0xff] %v608_v46  ;;  %806 = vst [vmem:[%s1762_s18 + $0x160] sm:$0xff] %v704_v47  ;;  %v497_v49 = vld [vmem:[%s1610_s22 + $0x1c0] sm:$0xff] }
 0x1ab   : > { %775 = vst [vmem:[%s1762_s18 + $0x68] sm:$0xff] %v610_v50  ;;  %807 = vst [vmem:[%s1762_s18 + $0x168] sm:$0xff] %v706_v51  ;;  %v613_v56 = vpop.f32.mrb[14].mxu0  ;;  %v709_v57 = vpop.f32.mrb[14].mxu1  ;;  %v466_v50 = vld [vmem:[%s1610_s22 + $0xc8] sm:$0xff] }
 0x1ac   : > { %v614_v58 = vadd.f32 %v613_v56, %v455_v52  ;;  %v710_v59 = vadd.f32 %v709_v57, %v487_v53  ;;  %v615_v60 = vpop.f32.mrb[15].mxu0  ;;  %v711_v61 = vpop.f32.mrb[15].mxu1  ;;  %v498_v51 = vld [vmem:[%s1610_s22 + $0x1c8] sm:$0xff] }
 0x1ad   : > { %v616_v62 = vadd.f32 %v615_v60, %v456_v54  ;;  %v712_v63 = vadd.f32 %v711_v61, %v488_v55  ;;  %v467_v60 = vld [vmem:[%s1610_s22 + $0xd0] sm:$0xff] }
 0x1ae   : > { %776 = vst [vmem:[%s1762_s18 + $0x70] sm:$0xff] %v614_v58  ;;  %808 = vst [vmem:[%s1762_s18 + $0x170] sm:$0xff] %v710_v59  ;;  %v499_v61 = vld [vmem:[%s1610_s22 + $0x1d0] sm:$0xff] }
 0x1af   : > { %777 = vst [vmem:[%s1762_s18 + $0x78] sm:$0xff] %v616_v62  ;;  %809 = vst [vmem:[%s1762_s18 + $0x178] sm:$0xff] %v712_v63  ;;  %v619_v4 = vpop.f32.mrb[16].mxu0  ;;  %v715_v5 = vpop.f32.mrb[16].mxu1  ;;  %v468_v62 = vld [vmem:[%s1610_s22 + $0xd8] sm:$0xff] }
 0x1b0   : > { %v620_v6 = vadd.f32 %v619_v4, %v457_v0  ;;  %v716_v7 = vadd.f32 %v715_v5, %v489_v1  ;;  %v621_v8 = vpop.f32.mrb[17].mxu0  ;;  %v717_v9 = vpop.f32.mrb[17].mxu1  ;;  %v500_v63 = vld [vmem:[%s1610_s22 + $0x1d8] sm:$0xff] }
 0x1b1   : > { %v622_v10 = vadd.f32 %v621_v8, %v458_v2  ;;  %v718_v11 = vadd.f32 %v717_v9, %v490_v3  ;;  %v469_v8 = vld [vmem:[%s1610_s22 + $0xe0] sm:$0xff] }
 0x1b2   : > { %778 = vst [vmem:[%s1762_s18 + $0x80] sm:$0xff] %v620_v6  ;;  %810 = vst [vmem:[%s1762_s18 + $0x180] sm:$0xff] %v716_v7  ;;  %v501_v9 = vld [vmem:[%s1610_s22 + $0x1e0] sm:$0xff] }
 0x1b3   : > { %779 = vst [vmem:[%s1762_s18 + $0x88] sm:$0xff] %v622_v10  ;;  %811 = vst [vmem:[%s1762_s18 + $0x188] sm:$0xff] %v718_v11  ;;  %v625_v16 = vpop.f32.mrb[18].mxu0  ;;  %v721_v17 = vpop.f32.mrb[18].mxu1  ;;  %v470_v10 = vld [vmem:[%s1610_s22 + $0xe8] sm:$0xff] }
 0x1b4   : > { %v626_v18 = vadd.f32 %v625_v16, %v459_v12  ;;  %v722_v19 = vadd.f32 %v721_v17, %v491_v13  ;;  %v627_v20 = vpop.f32.mrb[19].mxu0  ;;  %v723_v21 = vpop.f32.mrb[19].mxu1  ;;  %v502_v11 = vld [vmem:[%s1610_s22 + $0x1e8] sm:$0xff] }
 0x1b5   : > { %v628_v22 = vadd.f32 %v627_v20, %v460_v14  ;;  %v724_v23 = vadd.f32 %v723_v21, %v492_v15  ;;  %v471_v20 = vld [vmem:[%s1610_s22 + $0xf0] sm:$0xff] }
 0x1b6   : > { %780 = vst [vmem:[%s1762_s18 + $0x90] sm:$0xff] %v626_v18  ;;  %812 = vst [vmem:[%s1762_s18 + $0x190] sm:$0xff] %v722_v19  ;;  %v503_v21 = vld [vmem:[%s1610_s22 + $0x1f0] sm:$0xff] }
 0x1b7   : > { %781 = vst [vmem:[%s1762_s18 + $0x98] sm:$0xff] %v628_v22  ;;  %813 = vst [vmem:[%s1762_s18 + $0x198] sm:$0xff] %v724_v23  ;;  %v631_v28 = vpop.f32.mrb[20].mxu0  ;;  %v727_v29 = vpop.f32.mrb[20].mxu1  ;;  %v472_v22 = vld [vmem:[%s1610_s22 + $0xf8] sm:$0xff] }
 0x1b8   : > { %v632_v30 = vadd.f32 %v631_v28, %v461_v24  ;;  %v728_v31 = vadd.f32 %v727_v29, %v493_v25  ;;  %v633_v32 = vpop.f32.mrb[21].mxu0  ;;  %v729_v33 = vpop.f32.mrb[21].mxu1  ;;  %v504_v23 = vld [vmem:[%s1610_s22 + $0x1f8] sm:$0xff] }
 0x1b9   : > { %v634_v34 = vadd.f32 %v633_v32, %v462_v26  ;;  %v730_v35 = vadd.f32 %v729_v33, %v494_v27 }
 0x1ba   : > { %782 = vst [vmem:[%s1762_s18 + $0xa0] sm:$0xff] %v632_v30  ;;  %814 = vst [vmem:[%s1762_s18 + $0x1a0] sm:$0xff] %v728_v31 }
 0x1bb   : > { %783 = vst [vmem:[%s1762_s18 + $0xa8] sm:$0xff] %v634_v34  ;;  %815 = vst [vmem:[%s1762_s18 + $0x1a8] sm:$0xff] %v730_v35  ;;  %v637_v40 = vpop.f32.mrb[22].mxu0  ;;  %v733_v41 = vpop.f32.mrb[22].mxu1 }
 0x1bc   : > { %v638_v42 = vadd.f32 %v637_v40, %v463_v36  ;;  %v734_v43 = vadd.f32 %v733_v41, %v495_v37  ;;  %v639_v44 = vpop.f32.mrb[23].mxu0  ;;  %v735_v45 = vpop.f32.mrb[23].mxu1 }
 0x1bd   : > { %v640_v46 = vadd.f32 %v639_v44, %v464_v38  ;;  %v736_v47 = vadd.f32 %v735_v45, %v496_v39 }
 0x1be   : > { %784 = vst [vmem:[%s1762_s18 + $0xb0] sm:$0xff] %v638_v42  ;;  %816 = vst [vmem:[%s1762_s18 + $0x1b0] sm:$0xff] %v734_v43 }
 0x1bf   : > { %785 = vst [vmem:[%s1762_s18 + $0xb8] sm:$0xff] %v640_v46  ;;  %817 = vst [vmem:[%s1762_s18 + $0x1b8] sm:$0xff] %v736_v47  ;;  %v643_v52 = vpop.f32.mrb[24].mxu0  ;;  %v739_v53 = vpop.f32.mrb[24].mxu1 }
 0x1c0   : > { %v644_v54 = vadd.f32 %v643_v52, %v465_v48  ;;  %v740_v55 = vadd.f32 %v739_v53, %v497_v49  ;;  %v645_v56 = vpop.f32.mrb[25].mxu0  ;;  %v741_v57 = vpop.f32.mrb[25].mxu1 }
 0x1c1   : > { %v646_v58 = vadd.f32 %v645_v56, %v466_v50  ;;  %v742_v59 = vadd.f32 %v741_v57, %v498_v51 }
 0x1c2   : > { %786 = vst [vmem:[%s1762_s18 + $0xc0] sm:$0xff] %v644_v54  ;;  %818 = vst [vmem:[%s1762_s18 + $0x1c0] sm:$0xff] %v740_v55 }
 0x1c3   : > { %787 = vst [vmem:[%s1762_s18 + $0xc8] sm:$0xff] %v646_v58  ;;  %819 = vst [vmem:[%s1762_s18 + $0x1c8] sm:$0xff] %v742_v59  ;;  %v649_v0 = vpop.f32.mrb[26].mxu0  ;;  %v745_v1 = vpop.f32.mrb[26].mxu1 }
 0x1c4   : > { %v650_v2 = vadd.f32 %v649_v0, %v467_v60  ;;  %v746_v3 = vadd.f32 %v745_v1, %v499_v61  ;;  %v651_v4 = vpop.f32.mrb[27].mxu0  ;;  %v747_v5 = vpop.f32.mrb[27].mxu1 }
 0x1c5   : > { %v652_v6 = vadd.f32 %v651_v4, %v468_v62  ;;  %v748_v7 = vadd.f32 %v747_v5, %v500_v63 }
 0x1c6   : > { %788 = vst [vmem:[%s1762_s18 + $0xd0] sm:$0xff] %v650_v2  ;;  %820 = vst [vmem:[%s1762_s18 + $0x1d0] sm:$0xff] %v746_v3 }
 0x1c7   : > { %789 = vst [vmem:[%s1762_s18 + $0xd8] sm:$0xff] %v652_v6  ;;  %821 = vst [vmem:[%s1762_s18 + $0x1d8] sm:$0xff] %v748_v7  ;;  %v655_v12 = vpop.f32.mrb[28].mxu0  ;;  %v751_v13 = vpop.f32.mrb[28].mxu1 }
 0x1c8   : > { %v656_v14 = vadd.f32 %v655_v12, %v469_v8  ;;  %v752_v15 = vadd.f32 %v751_v13, %v501_v9  ;;  %v657_v16 = vpop.f32.mrb[29].mxu0  ;;  %v753_v17 = vpop.f32.mrb[29].mxu1 }
 0x1c9   : > { %v658_v18 = vadd.f32 %v657_v16, %v470_v10  ;;  %v754_v19 = vadd.f32 %v753_v17, %v502_v11 }
 0x1ca   : > { %790 = vst [vmem:[%s1762_s18 + $0xe0] sm:$0xff] %v656_v14  ;;  %822 = vst [vmem:[%s1762_s18 + $0x1e0] sm:$0xff] %v752_v15 }
 0x1cb   : > { %791 = vst [vmem:[%s1762_s18 + $0xe8] sm:$0xff] %v658_v18  ;;  %823 = vst [vmem:[%s1762_s18 + $0x1e8] sm:$0xff] %v754_v19  ;;  %v661_v24 = vpop.f32.mrb[30].mxu0  ;;  %v757_v25 = vpop.f32.mrb[30].mxu1 }
 0x1cc   : > { %v662_v26 = vadd.f32 %v661_v24, %v471_v20  ;;  %v758_v27 = vadd.f32 %v757_v25, %v503_v21  ;;  %v663_v28 = vpop.f32.mrb[31].mxu0  ;;  %v759_v29 = vpop.f32.mrb[31].mxu1 }
 0x1cd   : > { %v664_v30 = vadd.f32 %v663_v28, %v472_v22  ;;  %v760_v31 = vadd.f32 %v759_v29, %v504_v23 }
 0x1ce   : > { %792 = vst [vmem:[%s1762_s18 + $0xf0] sm:$0xff] %v662_v26  ;;  %824 = vst [vmem:[%s1762_s18 + $0x1f0] sm:$0xff] %v758_v27 }
 0x1cf   : > { %793 = vst [vmem:[%s1762_s18 + $0xf8] sm:$0xff] %v664_v30  ;;  %825 = vst [vmem:[%s1762_s18 + $0x1f8] sm:$0xff] %v760_v31 }
 0x1d0   : > { %1290 = shalt.err (!%p1287_p13)
}
 0x1d1   : > { %s1291_s28 = scalar_lea.hbm %s1887_s7, 8192  ;;  %s1295_s10 = scalar_lea.hbm %s1945_s3, 16384 }
 0x1d2   : > { %p1292_p11 = scmp.ne.s32.totalorder %s1887_s7, %s1291_s28  ;;  %p1296_p7 = scmp.lt.u32.totalorder %s1887_s7, %s1945_s3 }
 0x1d3   : > { %p1297_p4 = scmp.lt.u32.totalorder %s1295_s10, %s1291_s28  ;;  %p1299_p0 = scmp.lt.u32.totalorder %s1291_s28, %s1887_s7 }
 0x1d4   : > { %p1293_p2 = pnand %p1292_p11, %p1974_p10 }
 0x1d5   : > { %p1298_p3 = por %p1297_p4, %p1296_p7 }
 0x1d6   : > { %p1294_p5 = pneg %p1293_p2 }
 0x1d7   : > { %p1300_p8 = por %p1299_p0, %p1298_p3 }
 0x1d9   : > { %p1301_p9 = pnand %p1300_p8, %p1294_p5 }
 0x1db   : > { %1304 = shalt.err (!%p1301_p9)
}
 0x1dc   : > { %s1371_s11 = smov 256   ;;  %s1372_s19 = smov 16  }
 0x1dd   : > { %1117 = dma.vmem_to_hbm [thread:$0]  (%p1974_p10), %s1889_s20, 8192, %s1887_s7, %s827_s30, %s1371_s11, %s1371_s11, %s1372_s19  }
 0x1de PF: > { %s860_s9 = sand.u32 1, %s1343_s12   ;;  %p1975_p12 = scmp.ne.s32.totalorder %s1962_s27, 0 }
 0x1df   : > { %p1976_p1 = scmp.ge.s32.totalorder %s1363_s17, 2  ;;  %s861_s16 = scalar_lea.sflag [#allocation4], %s860_s9 }
 0x1e1   : > { %p1130_p6 = pnand %p1976_p1, %p1975_p12 }
 0x1e3   : > { %1338 = dma.done.wait (!%p1130_p6), %s861_s16, 8192  }
 0x1e4   : > { %1340 = vsyncadd (!%p1130_p6), %s861_s16, 4294959104  ;;  %s22_s17 = sadd.s32 1, %s1363_s17   ;;  %s1977_s18 = sld [smem:[#allocation14_spill]] }
 0x1e5   : > { %p19_p13 = scmp.ge.s32.totalorder %s22_s17, 4   ;;  %s1978_s15 = sld [smem:[#allocation12_spill]] }
 0x1e6   : > { %s1979_s16 = sld [smem:[#allocation13_spill]]  ;;  %s1980_s12 = smov %s1347_s13 }
 0x1e7   : > { %s1981_s13 = smov %s1351_s14  ;;  %21 = sbr.rel (!%p19_p13) target bundleno = 10 (0xa), region = 101 }
 0x1ea   : > { %s1982_s14 = smov %s1977_s18 }
 0x1ee   :  { %866 = vsyncpa [#allocation3], 1 }
 0x1ef   :  { %868 = vsyncpa [#allocation3 + $0x1], 1 }
 0x1f0   :  { %869 = vsyncpa [#allocation6], 1 }
 0x1f1   :  { %871 = vsyncpa [#allocation6 + $0x1], 1 }
 0x1f2   :  { %872 = vsyncpa [#allocation4], 1 }
 0x1f3   :  { %874 = vsyncpa [#allocation4 + $0x1], 1 }

</bundles_post_ra>
